<compile_context>
chip_gen: v5e
topology: v5e:2x2
jax: 0.10.0
libtpu: 0.0.40
codegen_flags: <defaults>
</compile_context>

<pallas_src>
import math

import jax
import jax.numpy as jnp
from jax.experimental import pallas as pl
from jax.experimental.pallas import tpu as pltpu


def pos_enc_kernel(x_ref, pe_ref, o_ref):
    # 3D path: x_ref/pe_ref/o_ref are all (ts, d_model)  -> plain add.
    # Flattened path: x_ref/o_ref are (B, tl), pe_ref is (1, tl) -> sublane bcast.
    o_ref[...] = x_ref[...] + pe_ref[...]


def make_positional_encoding(d_model, max_seq_length, dtype=jnp.float32):
    """Same table as the PyTorch module's registered buffer `pe` (squeezed)."""
    position = jnp.arange(max_seq_length, dtype=jnp.float32)[:, None]      # (L, 1)
    div_term = jnp.exp(
        jnp.arange(0, d_model, 2, dtype=jnp.float32)
        * (-math.log(10000.0) / d_model))                                  # (d_model//2,)
    angles = position * div_term                                           # (L, d_model//2)
    pe = jnp.zeros((max_seq_length, d_model), jnp.float32)
    pe = pe.at[:, 0::2].set(jnp.sin(angles))
    pe = pe.at[:, 1::2].set(jnp.cos(angles))
    return pe.astype(dtype)


def _choose_row_tile(S, D, itemsize, target_bytes=2 << 20):
    """Largest sequence tile ~target_bytes, multiple of the sublane count,
    preferring a divisor of S (avoids a ragged, masked tail block)."""
    sub = max(8, 32 // itemsize)                     # f32: 8, bf16: 16, int8: 32
    max_rows = max(sub, target_bytes // (D * itemsize))
    if S <= max_rows:
        return S                                     # full extent is always legal
    ts = (max_rows // sub) * sub
    t = ts
    while t >= sub:                                  # prefer ts | S
        if S % t == 0:
            return t
        t -= sub
    return ts


def _choose_lane_tile(B, L, itemsize, target_bytes=2 << 20):
    """Largest lane tile ~target_bytes (per (B, tl) block), multiple of 128,
    preferring a divisor of L."""
    max_lanes = max(128, target_bytes // (B * itemsize))
    tl = min(L, (max_lanes // 128) * 128)
    t = tl
    while t >= 128:
        if L % t == 0:
            return t
        t -= 128
    return tl


def positional_encoding(x, pe):
    """x: (B, S, d_model); pe: (max_seq_length, d_model). Returns x + pe[:S]."""
    B, S, D = x.shape
    dtype = x.dtype
    itemsize = jnp.dtype(dtype).itemsize
    pe_s = pe[:S].astype(dtype)                      # == self.pe[:, :x.size(1)]

    # Honest scheduler hint: pe is streamed from HBM exactly once.
    cost = pl.CostEstimate(
        flops=B * S * D,
        transcendentals=0,
        bytes_accessed=(2 * B * S * D + S * D) * itemsize,
    )

    if D % 128 == 0:
        # Lane-dense already: keep (B, S, D), tile along S, iterate batch fastest
        # so the pe block index is unchanged across consecutive steps (DMA skipped).
        ts = _choose_row_tile(S, D, itemsize)
        grid = (pl.cdiv(S, ts), B)
        out = pl.pallas_call(
            pos_enc_kernel,
            out_shape=jax.ShapeDtypeStruct((B, S, D), dtype),
            grid_spec=pltpu.PrefetchScalarGridSpec(
                num_scalar_prefetch=0,
                grid=grid,
                in_specs=[
                    pl.BlockSpec((pl.Squeezed(), ts, D), lambda s, b: (b, s, 0)),  # x
                    pl.BlockSpec((ts, D), lambda s, b: (s, 0)),                    # pe (reused over b)
                ],
                out_specs=pl.BlockSpec((pl.Squeezed(), ts, D), lambda s, b: (b, s, 0)),
            ),
            compiler_params=pltpu.CompilerParams(
                dimension_semantics=("parallel", "parallel")),
            cost_estimate=cost,
        )(x, pe_s)
        return out

    # d_model < 128 (or not a multiple of 128): flatten to a lane-dense 2D slab
    # so stores are unmasked full-lane vst.  Batch is folded into the block, so
    # pe is streamed exactly once per lane tile.
    L = S * D
    x2 = x.reshape(B, L)
    pe2 = pe_s.reshape(1, L)
    if L % 128 == 0:
        tl = _choose_lane_tile(B, L, itemsize)
    else:
        tl = L                                       # full-extent block is always legal
    grid = (pl.cdiv(L, tl),)
    out = pl.pallas_call(
        pos_enc_kernel,
        out_shape=jax.ShapeDtypeStruct((B, L), dtype),
        grid_spec=pltpu.PrefetchScalarGridSpec(
            num_scalar_prefetch=0,
            grid=grid,
            in_specs=[
                pl.BlockSpec((B, tl), lambda l: (0, l)),   # x slab
                pl.BlockSpec((1, tl), lambda l: (0, l)),   # pe slab (bcast over B sublanes)
            ],
            out_specs=pl.BlockSpec((B, tl), lambda l: (0, l)),
        ),
        compiler_params=pltpu.CompilerParams(dimension_semantics=("parallel",)),
        cost_estimate=cost,
    )(x2, pe2)
    return out.reshape(B, S, D)


if __name__ == "__main__":
    key = jax.random.PRNGKey(0)
    k0, k1 = jax.random.split(key)

    # Demo shapes consistent with the module: (batch, seq, d_model).
    # d_model=32 < 128 -> exercises the lane-dense flattened path.
    B, S, d_model, max_seq_length = 2, 8, 32, 16
    x = jax.random.normal(k0, (B, S, d_model), jnp.float32)
    pe = make_positional_encoding(d_model, max_seq_length)
    y = jax.block_until_ready(positional_encoding(x, pe))
    ref = x + pe[None, :S, :]
    assert y.shape == (B, S, d_model)
    assert jnp.allclose(y, ref, atol=1e-6, rtol=1e-6)

    # Also exercise the lane-aligned path (d_model a multiple of 128) at small size.
    B2, S2, d2, L2 = 2, 16, 128, 32
    x2 = jax.random.normal(k1, (B2, S2, d2), jnp.float32)
    pe2 = make_positional_encoding(d2, L2)
    y2 = jax.block_until_ready(positional_encoding(x2, pe2))
    ref2 = x2 + pe2[None, :S2, :]
    assert jnp.allclose(y2, ref2, atol=1e-6, rtol=1e-6)

    print("KERNEL_OK")
</pallas_src>

<mosaic_0001>
module attributes {stable_mosaic.version = 11 : i64} {
  func.func @pos_enc_kernel(%arg0: i32, %arg1: memref<2x256xf32, #tpu.memory_space<vmem>>, %arg2: memref<1x256xf32, #tpu.memory_space<vmem>>, %arg3: memref<2x256xf32, #tpu.memory_space<vmem>>) attributes {dimension_semantics = [#tpu.dimension_semantics<parallel>], iteration_bounds = array<i64: 1>, scalar_prefetch = 0 : i64, scratch_operands = 0 : i64, tpu.core_type = #tpu.core_type<tc>, window_params = [{transform_indices = @transform_0, window_bounds = array<i64: 2, 256>}, {transform_indices = @transform_1, window_bounds = array<i64: 1, 256>}, {transform_indices = @transform_2, window_bounds = array<i64: 2, 256>}]} {
    %c0 = arith.constant 0 : index
    %c0_0 = arith.constant 0 : index
    %0 = vector.load %arg1[%c0, %c0_0] : memref<2x256xf32, #tpu.memory_space<vmem>>, vector<2x256xf32>
    %c0_1 = arith.constant 0 : index
    %c0_2 = arith.constant 0 : index
    %1 = vector.load %arg2[%c0_1, %c0_2] : memref<1x256xf32, #tpu.memory_space<vmem>>, vector<1x256xf32>
    %2 = vector.broadcast %1 : vector<1x256xf32> to vector<2x256xf32>
    %3 = arith.addf %0, %2 : vector<2x256xf32>
    %c0_3 = arith.constant 0 : index
    %c0_4 = arith.constant 0 : index
    %4 = vector.load %arg3[%c0_3, %c0_4] : memref<2x256xf32, #tpu.memory_space<vmem>>, vector<2x256xf32>
    tpu.vector_store %arg3[%c0_3, %c0_4], %3 {strides = array<i32>} : memref<2x256xf32, #tpu.memory_space<vmem>>, vector<2x256xf32>,
    return
  }
  func.func @transform_0(%arg0: i32) -> (i32, i32) {
    %c0_i32 = arith.constant 0 : i32
    %c0_i32_0 = arith.constant 0 : i32
    return %c0_i32, %arg0 : i32, i32
  }
  func.func @transform_1(%arg0: i32) -> (i32, i32) {
    %c0_i32 = arith.constant 0 : i32
    %c0_i32_0 = arith.constant 0 : i32
    return %c0_i32, %arg0 : i32, i32
  }
  func.func @transform_2(%arg0: i32) -> (i32, i32) {
    %c0_i32 = arith.constant 0 : i32
    %c0_i32_0 = arith.constant 0 : i32
    return %c0_i32, %arg0 : i32, i32
  }
}

</mosaic_0001>

<bundles_post_ra>
// kernel: tpu_custom_call.1
= control target key start
LH: loop header
LB: loop body
LE: loop exit
PB: predicated region body
PF: predicated region fallthrough
CT: control target
= control target key end

     0   :  { %7 = vsyncpa [#allocation3], 0  ;;  %s177_s0 = inlined_call_operand.hbm [shape: f32[2,256], index: 0, kind: input, shape index: {}]   ;;  %s178_s1 = inlined_call_operand.hbm [shape: f32[1,256], index: 1, kind: input, shape index: {}]   ;;  %s179_s2 = inlined_call_operand.hbm [shape: f32[2,256], index: 2, kind: output, shape index: {}]  }
   0x1   :  { %8 = vsyncpa [#allocation6], 0 }
   0x2   :  { %9 = vsyncpa [#allocation4], 0  ;;  %s15_s11 = sshll.u32 %s177_s0, 4  ;;  %s150_s12 = smov [#allocation2]   ;;  %s16_s11 = int_to_ptr.hbm [resolvable:$true] %s15_s11 }
   0x3   :  { %s17_s13 = sshll.u32 %s150_s12, 4  ;;  %s26_s16 = sshll.u32 %s178_s1, 4  ;;  %s18_s13 = int_to_ptr.vmem [resolvable:$true] %s17_s13  ;;  %s27_s16 = int_to_ptr.hbm [resolvable:$true] %s26_s16 }
   0x4   :  { %20 = dma.hbm_to_vmem [thread:$0]  %s16_s11, 64, %s18_s13, [#allocation3]  }
   0x5   :  { %s151_s17 = smov [#allocation5]  }
   0x6   :  { %s28_s18 = sshll.u32 %s151_s17, 4  ;;  %s29_s18 = int_to_ptr.vmem [resolvable:$true] %s28_s18 }
   0x7   :  { %31 = dma.hbm_to_vmem [thread:$0]  %s27_s16, 32, %s29_s18, [#allocation6]  }
   0x8   :  { %144 = dma.done.wait [#allocation3], 64  }
   0x9   :  { %145 = vsyncadd [#allocation3], 4294967232 }
   0xa   :  { %146 = dma.done.wait [#allocation6], 32  }
   0xb   :  { %147 = vsyncadd [#allocation6], 4294967264  ;;  %v41_v0 = vld [vmem:[#allocation5] sm:$0x3]  ;;  %vm46_vm0 = vcmask 1041408   ;;  %s152_s0 = smov [#allocation7]  }
   0xc   :  { %v43_v1 = vperm.slane %v41_v0, 0  ;;  %v44_v2 = vperm.slane %v41_v0, 1  ;;  %v40_v3 = vld [vmem:[#allocation2] sm:$0xf]  ;;  %s56_s19 = sshll.u32 %s152_s0, 4  ;;  %s58_s21 = sshll.u32 %s179_s2, 4  ;;  %s57_s19 = int_to_ptr.vmem [resolvable:$true] %s56_s19  ;;  %s59_s21 = int_to_ptr.hbm [resolvable:$true] %s58_s21 }
   0xe   :  { %v45_v4 = vrot.slane %v44_v2, 6 }
  0x10   :  { %v47_v5 = vsel %vm46_vm0, %v43_v1, %v45_v4 }
  0x11   :  { %v49_v6 = vadd.f32 %v47_v5, %v40_v3 }
  0x13   :  { %50 = vst [vmem:[#allocation7] sm:$0xf] %v49_v6 }
  0x14   :  { %61 = dma.vmem_to_hbm [thread:$0]  %s57_s19, 64, %s59_s21, [#allocation4]  }
  0x15   :  { %148 = dma.done.wait [#allocation4], 64  }
  0x16   :  { %149 = vsyncadd [#allocation4], 4294967232 }
  0x17   :  { %66 = vsyncpa [#allocation3], 1 }
  0x18   :  { %67 = vsyncpa [#allocation6], 1 }
  0x19   :  { %68 = vsyncpa [#allocation4], 1 }

</bundles_post_ra>
